<compile_context>
chip_gen: v6e
topology: v6e:2x2x1
jax: 0.10.0
libtpu: 0.0.40
codegen_flags: <defaults>
</compile_context>

<pallas_src>
import jax
import jax.numpy as jnp
from jax.experimental import pallas as pl
from jax.experimental.pallas import tpu as pltpu


# --------------------------------------------------------------------------
# VMEM limit: ~75% of physical capacity (≈48 MB on v7x, ≈96 MB on v5e/v6e).
# --------------------------------------------------------------------------
def _vmem_limit_bytes():
    try:
        cap = pltpu.get_tpu_info().vmem_capacity_bytes
        return int(cap) * 3 // 4
    except Exception:
        return None   # fall back to the compiler default


_VMEM_LIMIT = _vmem_limit_bytes()


def _pick_tile(n, candidates=(512, 256, 128)):
    for t in candidates:
        if n % t == 0:
            return t
    return n   # small / odd extent: single tile (block == full dim)


# --------------------------------------------------------------------------
# Stage 1 / Stage 3 kernels: lane-dense linear layers.
# --------------------------------------------------------------------------
def _matmul_kernel(x_ref, w_ref, o_ref):
    """(tm, Cin) @ (Cin, Cout) -> (tm, Cout), f32 accumulate."""
    o_ref[...] = jnp.dot(x_ref[...], w_ref[...],
                         preferred_element_type=jnp.float32).astype(o_ref.dtype)


def _matmul_bias_kernel(x_ref, w_ref, b_ref, o_ref):
    """(tm, Cin) @ (Cin, Cout) + (1, Cout) -> (tm, Cout), f32 accumulate."""
    acc = jnp.dot(x_ref[...], w_ref[...], preferred_element_type=jnp.float32)
    o_ref[...] = (acc + b_ref[...]).astype(o_ref.dtype)


def _linear(x2d, w, b=None, out_dtype=jnp.bfloat16):
    """x2d: (M, Cin) bf16; w: (Cin, Cout) bf16; b: (1, Cout) f32 or None."""
    M, Cin = x2d.shape
    Cout = w.shape[1]
    tm = _pick_tile(M)
    # NOTE(perf): the constant-index weight block could be single-buffered
    # (pipeline_mode=pl.Buffered(1)) to save VMEM on v7x for very large C.
    in_specs = [
        pl.BlockSpec((tm, Cin), lambda i: (i, 0)),
        pl.BlockSpec((Cin, Cout), lambda i: (0, 0)),
    ]
    args = (x2d, w)
    kernel = _matmul_kernel
    if b is not None:
        in_specs.append(pl.BlockSpec((1, Cout), lambda i: (0, 0)))
        args = (x2d, w, b)
        kernel = _matmul_bias_kernel
    return pl.pallas_call(
        kernel,
        out_shape=jax.ShapeDtypeStruct((M, Cout), out_dtype),
        grid=(M // tm,),
        in_specs=in_specs,
        out_specs=pl.BlockSpec((tm, Cout), lambda i: (i, 0)),
        compiler_params=pltpu.CompilerParams(
            dimension_semantics=("parallel",),
            vmem_limit_bytes=_VMEM_LIMIT),
    )(*args)


# --------------------------------------------------------------------------
# Stage 2 kernel: flash attention over precomputed Q/K/V (B, H, N, hd).
# --------------------------------------------------------------------------
def _flash_attn_kernel(q_ref, k_ref, v_ref, o_ref, m_sc, l_sc, acc_sc):
    """Grid: (batch, q-tiles, kv-tiles); kv axis innermost reduction.

    q_ref  : (1, H, tq, hd) bf16   (softmax scale pre-folded into W_q)
    k_ref  : (1, H, tk, hd) bf16
    v_ref  : (1, H, tk, hd) bf16
    o_ref  : (1, H, tq, hd) bf16
    m_sc   : (H, tq, 1)  f32  running row max
    l_sc   : (H, tq, 1)  f32  running row sum
    acc_sc : (H, tq, hd) f32  running unnormalized output
    """
    ki = pl.program_id(2)

    @pl.when(ki == 0)
    def _init():
        m_sc[...] = jnp.full(m_sc.shape, -jnp.inf, dtype=m_sc.dtype)
        l_sc[...] = jnp.zeros(l_sc.shape, dtype=l_sc.dtype)
        acc_sc[...] = jnp.zeros(acc_sc.shape, dtype=acc_sc.dtype)

    q = q_ref[0]                                   # (H, tq, hd)
    k = k_ref[0]                                   # (H, tk, hd)
    v = v_ref[0]                                   # (H, tk, hd)

    # ---- online softmax over kv tiles (statistics in f32) ------------------
    s = jnp.einsum('hqd,hkd->hqk', q, k,
                   preferred_element_type=jnp.float32)          # (H, tq, tk)
    m_prev = m_sc[...]
    m_new = jnp.maximum(m_prev, jnp.max(s, axis=-1, keepdims=True))
    alpha = jnp.exp(m_prev - m_new)                              # (H, tq, 1)
    p = jnp.exp(s - m_new)                                       # (H, tq, tk)
    l_sc[...] = alpha * l_sc[...] + jnp.sum(p, axis=-1, keepdims=True)
    pv = jnp.einsum('hqk,hkd->hqd', p.astype(v.dtype), v,
                    preferred_element_type=jnp.float32)          # (H, tq, hd)
    acc_sc[...] = alpha * acc_sc[...] + pv
    m_sc[...] = m_new
    # attn_drop: p=0.0 (eval) -> identity

    @pl.when(ki == pl.num_programs(2) - 1)
    def _finalize():
        o = acc_sc[...] * pl.reciprocal(l_sc[...], approx=True)  # (H, tq, hd)
        o_ref[0] = o.astype(o_ref.dtype)


# --------------------------------------------------------------------------
# Wrapper: full Attention forward.
# --------------------------------------------------------------------------
def attention_pallas(x, w_qkv, w_proj, b_proj, *, num_heads, qk_scale=None):
    """x: (B, N, C); w_qkv: (3C, C) torch layout; w_proj: (C, C); b_proj: (C,)."""
    B, N, C = x.shape
    H = num_heads
    assert C % H == 0
    hd = C // H
    scale = qk_scale if qk_scale is not None else hd ** (-0.5)

    # ---- one-time weight transforms (plain JAX, outside the kernels) ------
    # torch nn.Linear: y = x @ W.T with W of shape (out, in) -> carry W.T.
    # qkv output channel layout is [Q | K | V] blocks of width C, so the
    # softmax scale is folded into the first C columns of W_qkv.T.
    scale_cols = jnp.concatenate(
        [jnp.full((C,), scale, jnp.float32), jnp.ones((2 * C,), jnp.float32)])
    wqkv_t = (w_qkv.T * scale_cols[None, :]).astype(jnp.bfloat16)   # (C, 3C)
    wp_t = w_proj.T.astype(jnp.bfloat16)                            # (C, C)
    bp = b_proj.reshape(1, C).astype(jnp.float32)
    x_bf = x.astype(jnp.bfloat16)

    # ---- stage 1: QKV projection, once per token (hoisted out of kv loop) --
    qkv = _linear(x_bf.reshape(B * N, C), wqkv_t, out_dtype=jnp.bfloat16)
    qkv = qkv.reshape(B, N, 3, H, hd)
    q = jnp.transpose(qkv[:, :, 0], (0, 2, 1, 3))   # (B, H, N, hd) bf16
    k = jnp.transpose(qkv[:, :, 1], (0, 2, 1, 3))
    v = jnp.transpose(qkv[:, :, 2], (0, 2, 1, 3))
    # TODO(synk): for N that fits one tile, a fully fused x->QKV->attn->proj
    # kernel would save two HBM round-trips; the hoisted form is used
    # unconditionally here for simplicity.

    # ---- stage 2: flash attention over (q-tile, kv-tile) -------------------
    # Scores never exceed an (H, tq, tk) f32 tile (scales to large N).
    # (v6e can profitably sweep tq/tk up to 512 with the raised VMEM limit.)
    tq = tk = _pick_tile(N, (256, 128))
    # TODO(synk): very large N not divisible by 128 falls back to a single
    # tile; pad N / add a masked remainder path for that regime.
    grid = (B, N // tq, N // tk)
    attn_out = pl.pallas_call(
        _flash_attn_kernel,
        out_shape=jax.ShapeDtypeStruct((B, H, N, hd), jnp.bfloat16),
        grid_spec=pltpu.PrefetchScalarGridSpec(
            num_scalar_prefetch=0,
            grid=grid,
            in_specs=[
                pl.BlockSpec((1, H, tq, hd), lambda b, qi, ki: (b, 0, qi, 0)),
                pl.BlockSpec((1, H, tk, hd), lambda b, qi, ki: (b, 0, ki, 0)),
                pl.BlockSpec((1, H, tk, hd), lambda b, qi, ki: (b, 0, ki, 0)),
            ],
            out_specs=pl.BlockSpec((1, H, tq, hd),
                                   lambda b, qi, ki: (b, 0, qi, 0)),
            scratch_shapes=[
                pltpu.VMEM((H, tq, 1), jnp.float32),    # running max m
                pltpu.VMEM((H, tq, 1), jnp.float32),    # running sum l
                pltpu.VMEM((H, tq, hd), jnp.float32),   # accumulator
            ],
        ),
        compiler_params=pltpu.CompilerParams(
            dimension_semantics=("parallel", "parallel", "arbitrary"),
            vmem_limit_bytes=_VMEM_LIMIT),
    )(q, k, v)

    # ---- glue: head concat (B,H,N,hd) -> (B*N, C)  (layout plumbing, XLA) --
    y = jnp.transpose(attn_out, (0, 2, 1, 3)).reshape(B * N, C)

    # ---- stage 3: output projection, one lane-dense (tm,C)x(C,C) + bias ----
    out = _linear(y, wp_t, bp, out_dtype=x.dtype)
    # proj_drop: p=0.0 (eval) -> identity
    return out.reshape(B, N, C)


# --------------------------------------------------------------------------
# Pure-JAX f32 reference matching the PyTorch forward exactly.
# --------------------------------------------------------------------------
def attention_ref(x, w_qkv, w_proj, b_proj, *, num_heads):
    B, N, C = x.shape
    hd = C // num_heads
    scale = hd ** (-0.5)
    qkv = x @ w_qkv.T                                   # (B, N, 3C)
    qkv = qkv.reshape(B, N, 3, num_heads, hd)
    qkv = jnp.transpose(qkv, (2, 0, 3, 1, 4))           # (3, B, H, N, hd)
    q, k, v = qkv[0], qkv[1], qkv[2]
    attn = jnp.einsum("bhqd,bhkd->bhqk", q, k) * scale
    attn = jax.nn.softmax(attn, axis=-1)
    out = jnp.einsum("bhqk,bhkd->bhqd", attn, v)        # (B, H, N, hd)
    out = jnp.transpose(out, (0, 2, 1, 3)).reshape(B, N, C)
    return out @ w_proj.T + b_proj


if __name__ == "__main__":
    # Small shapes consistent with the module: dim=32, num_heads=4, seq=16, batch=2
    B, N, C, H = 2, 16, 32, 4

    key = jax.random.PRNGKey(0)
    kx, kq, kp, kb = jax.random.split(key, 4)
    x = jax.random.normal(kx, (B, N, C), dtype=jnp.float32)
    # Deterministic synthetic parameters (torch Linear shapes: (out, in))
    w_qkv = jax.random.normal(kq, (3 * C, C), dtype=jnp.float32) * 0.05
    w_proj = jax.random.normal(kp, (C, C), dtype=jnp.float32) * 0.05
    b_proj = jax.random.normal(kb, (C,), dtype=jnp.float32) * 0.05

    out = attention_pallas(x, w_qkv, w_proj, b_proj, num_heads=H)
    out = jax.block_until_ready(out)

    ref = attention_ref(x, w_qkv, w_proj, b_proj, num_heads=H)
    assert out.shape == (B, N, C)
    # bf16 matmul operands (f32 accumulation) -> bf16-level tolerance
    max_err = float(jnp.max(jnp.abs(out - ref)))
    assert max_err < 2e-2, f"mismatch vs reference, max abs err = {max_err}"

    print("KERNEL_OK")
</pallas_src>

<mosaic_0001>
module attributes {stable_mosaic.version = 11 : i64} {
  func.func @_matmul_kernel(%arg0: i32, %arg1: memref<32x32xbf16, #tpu.memory_space<vmem>>, %arg2: memref<32x96xbf16, #tpu.memory_space<vmem>>, %arg3: memref<32x96xbf16, #tpu.memory_space<vmem>>) attributes {dimension_semantics = [#tpu.dimension_semantics<parallel>], iteration_bounds = array<i64: 1>, scalar_prefetch = 0 : i64, scratch_operands = 0 : i64, tpu.core_type = #tpu.core_type<tc>, window_params = [{transform_indices = @transform_0, window_bounds = array<i64: 32, 32>}, {pipeline_mode = #tpu.pipeline_mode<synchronous>, transform_indices = @transform_1, window_bounds = array<i64: 32, 96>}, {transform_indices = @transform_2, window_bounds = array<i64: 32, 96>}]} {
    %c0 = arith.constant 0 : index
    %c0_0 = arith.constant 0 : index
    %0 = vector.load %arg1[%c0, %c0_0] : memref<32x32xbf16, #tpu.memory_space<vmem>>, vector<32x32xbf16>
    %c0_1 = arith.constant 0 : index
    %c0_2 = arith.constant 0 : index
    %1 = vector.load %arg2[%c0_1, %c0_2] : memref<32x96xbf16, #tpu.memory_space<vmem>>, vector<32x96xbf16>
    %cst = arith.constant dense<0.000000e+00> : vector<32x96xf32>
    %2 = tpu.matmul %0, %1, %cst {dimension_numbers = #tpu.dot_dimension_numbers<[1], [0], [0], [1], [0, 0, 1, 1], [], []>} : vector<32x32xbf16>, vector<32x96xbf16>, vector<32x96xf32> -> vector<32x96xf32>
    %3 = arith.truncf %2 : vector<32x96xf32> to vector<32x96xbf16>
    %c0_3 = arith.constant 0 : index
    %c0_4 = arith.constant 0 : index
    %4 = vector.load %arg3[%c0_3, %c0_4] : memref<32x96xbf16, #tpu.memory_space<vmem>>, vector<32x96xbf16>
    tpu.vector_store %arg3[%c0_3, %c0_4], %3 {strides = array<i32>} : memref<32x96xbf16, #tpu.memory_space<vmem>>, vector<32x96xbf16>,
    return
  }
  func.func @transform_0(%arg0: i32) -> (i32, i32) {
    %c0_i32 = arith.constant 0 : i32
    %c0_i32_0 = arith.constant 0 : i32
    return %arg0, %c0_i32 : i32, i32
  }
  func.func @transform_1(%arg0: i32) -> (i32, i32) {
    %c0_i32 = arith.constant 0 : i32
    %c0_i32_0 = arith.constant 0 : i32
    %c0_i32_1 = arith.constant 0 : i32
    return %c0_i32, %c0_i32_0 : i32, i32
  }
  func.func @transform_2(%arg0: i32) -> (i32, i32) {
    %c0_i32 = arith.constant 0 : i32
    %c0_i32_0 = arith.constant 0 : i32
    return %arg0, %c0_i32 : i32, i32
  }
}

</mosaic_0001>

<bundles_post_ra>
// kernel: tpu_custom_call.1
= control target key start
LH: loop header
LB: loop body
LE: loop exit
PB: predicated region body
PF: predicated region fallthrough
CT: control target
= control target key end

     0   :  { %7 = vsyncpa [#allocation3], 0  ;;  %s305_s0 = inlined_call_operand.hbm [shape: bf16[32,32], index: 0, kind: input, shape index: {}]   ;;  %s306_s1 = inlined_call_operand.hbm [shape: bf16[32,96], index: 1, kind: input, shape index: {}]   ;;  %s307_s2 = inlined_call_operand.hbm [shape: bf16[32,96], index: 2, kind: output, shape index: {}]  }
   0x1   :  { %8 = vsyncpa [#allocation6], 0 }
   0x2   :  { %9 = vsyncpa [#allocation4], 0  ;;  %s267_s9 = smov [#allocation2]  }
   0x3   :  { %s15_s10 = sshll.u32 %s267_s9, 4  ;;  %s16_s10 = int_to_ptr.vmem [resolvable:$true] %s15_s10 }
   0x4   :  { %s209_s11 = scalar_lea.vmem %s16_s10, 256  ;;  %p214_p1 = scmp.lt.s32.totalorder %s16_s10, %s16_s10 }
   0x5   :  { %p210_p0 = scmp.ne.s32.totalorder %s16_s10, %s209_s11  ;;  %p215_p2 = scmp.lt.s32.totalorder %s209_s11, %s209_s11 }
   0x7   :  { %p216_p3 = por %p215_p2, %p214_p1 }
   0x9   :  { %p217_p4 = pnand %p216_p3, %p210_p0 }
   0xb   :  { %220 = shalt.err (!%p217_p4)
}
   0xc   :  { %s268_s12 = smov 64   ;;  %s269_s13 = smov 4  }
   0xd   :  { %21 = dma.hbm_to_vmem [thread:$0]  %s305_s0, 256, %s16_s10, [#allocation3], %s268_s12, %s268_s12, %s269_s13  }
   0xe   :  { %s270_s16 = smov [#allocation5]  }
   0xf   :  { %s27_s17 = sshll.u32 %s270_s16, 4  ;;  %s28_s17 = int_to_ptr.vmem [resolvable:$true] %s27_s17 }
  0x10   :  { %s229_s18 = scalar_lea.vmem %s28_s17, 256  ;;  %p234_p6 = scmp.lt.s32.totalorder %s28_s17, %s28_s17 }
  0x11   :  { %p230_p5 = scmp.ne.s32.totalorder %s28_s17, %s229_s18  ;;  %p235_p7 = scmp.lt.s32.totalorder %s229_s18, %s229_s18 }
  0x13   :  { %p236_p8 = por %p235_p7, %p234_p6 }
  0x15   :  { %p237_p9 = pnand %p236_p8, %p230_p5 }
  0x17   :  { %240 = shalt.err (!%p237_p9)
}
  0x18   :  { %33 = dma.hbm_to_vmem [thread:$0]  %s306_s1, 256, %s28_s17, [#allocation6], %s268_s12, %s268_s12, %s269_s13  }
  0x19   :  { %261 = dma.done.wait [#allocation3], 256  }
  0x1a   :  { %262 = vsyncadd [#allocation3], 4294967040 }
  0x1b   :  { %263 = dma.done.wait [#allocation6], 256  }
  0x1c   :  { %264 = vsyncadd [#allocation6], 4294967040  ;;  %v197_v0 = vld [vmem:[#allocation5 + $0x8] sm:$0xff]   ;;  %v198_v1 = vld [vmem:[#allocation5] sm:$0xff]   ;;  %vm71_vm0 = vcmask 261120   ;;  %vm143_vm1 = vcmask 781312  }
  0x1d   :  { %184 = vmatprep.subr.bf16.mxu0 %v197_v0  ;;  %v199_v2 = vld [vmem:[#allocation2] sm:$0xff]   ;;  %v200_v3 = vld [vmem:[#allocation2 + $0x8] sm:$0xff]   ;;  %s271_s0 = smov [#allocation7]  }
  0x1e   :  { %185 = vmatpush3.bf16.msra.mxu0 %v197_v0  ;;  %188 = vmatprep.mubr.msk.bf16.mxu0 %vm71_vm0, %v199_v2  ;;  %s153_s1 = sshll.u32 %s271_s0, 4  ;;  %s154_s1 = int_to_ptr.vmem [resolvable:$true] %s153_s1 }
  0x1f   :  { %186 = vmatprep.subr.bf16.mxu0 %v198_v1  ;;  %s241_s21 = scalar_lea.vmem %s154_s1, 256  ;;  %p246_p11 = scmp.lt.s32.totalorder %s154_s1, %s154_s1 }
  0x20   :  { %p242_p10 = scmp.ne.s32.totalorder %s154_s1, %s241_s21  ;;  %p247_p12 = scmp.lt.s32.totalorder %s241_s21, %s241_s21 }
  0x22   :  { %187 = vmatpush3.bf16.msra.mxu0 %v198_v1  ;;  %p248_p13 = por %p247_p12, %p246_p11 }
  0x24   :  { %p249_p0 = pnand %p248_p13, %p242_p10 }
  0x25   :  { %189 = vmatmul.mubr.msk.bf16.vlgmr.msra.gmra.mxu0 %vm71_vm0, %v200_v3 }
  0xe5   :  { %v190_v4 = vpop.f32.mrf.mxu0 }
  0xe6   :  { %v178_v5 = vpack.c.bf16 %v190_v4, %v190_v4 }
  0xe7   :  { %v112_v6 = vpop.f32.mrf.mxu0 }
  0xe8   :  { %146 = vst.msk [vmem:[#allocation7 + $0x8] sm:$0xf] %vm143_vm1, %v178_v5  ;;  %v176_v7 = vpack.c.bf16 %v112_v6, %v112_v6 }
  0xe9   :  { %v191_v8 = vpop.f32.mrf.mxu0 }
  0xea   :  { %144 = vst.msk [vmem:[#allocation7] sm:$0xf] %vm143_vm1, %v176_v7  ;;  %v179_v9 = vpack.c.bf16 %v191_v8, %v191_v8 }
  0xeb   :  { %v115_v10 = vpop.f32.mrf.mxu0 }
  0xec   :  { %147 = vst.msk [vmem:[#allocation7 + $0xc] sm:$0xf] %vm143_vm1, %v179_v9  ;;  %v177_v11 = vpack.c.bf16 %v115_v10, %v115_v10 }
  0xee   :  { %145 = vst.msk [vmem:[#allocation7 + $0x4] sm:$0xf] %vm143_vm1, %v177_v11 }
  0xef   :  { %252 = shalt.err (!%p249_p0)
}
  0xf0   :  { %159 = dma.vmem_to_hbm [thread:$0]  %s154_s1, 256, %s307_s2, [#allocation4], %s268_s12, %s268_s12, %s269_s13  }
  0xf1   :  { %265 = dma.done.wait [#allocation4], 256  }
  0xf2   :  { %266 = vsyncadd [#allocation4], 4294967040 }
  0xf3   :  { %163 = vsyncpa [#allocation3], 1 }
  0xf4   :  { %164 = vsyncpa [#allocation6], 1 }
  0xf5   :  { %165 = vsyncpa [#allocation4], 1 }

</bundles_post_ra>
